<compile_context>
chip_gen: v5e
topology: v5e:2x2
jax: 0.10.0
libtpu: 0.0.40
codegen_flags: <defaults>
</compile_context>

<pallas_src>
import math
import functools

import jax
import jax.numpy as jnp
from jax import lax
from jax.experimental import pallas as pl
from jax.experimental.pallas import tpu as pltpu


def _eca_kernel_size(channels, gamma=2, b_hyper=1):
    k = int(abs((math.log(channels, 2) + b_hyper) / gamma))
    return k if k % 2 else k + 1


def _round_up(x, m):
    return -(-x // m) * m


def _choose_hw_tile(channels, hw, itemsize, target_block_bytes):
    """Largest multiple of 128 lanes whose (1, C, tile) block fits the byte budget,
    capped at the 128-rounded spatial extent. Ragged last tiles are handled by
    in-kernel masking (pool pass) / discarded OOB writes (apply pass), so no
    divisibility constraint is imposed."""
    target = min(int(target_block_bytes), 10 * 1024 * 1024)  # keep 4x tile well <48MiB
    hw128 = _round_up(hw, 128)
    max_lanes = max(128, (target // max(1, channels * itemsize)) // 128 * 128)
    return min(hw128, max_lanes)


def _channel_conv_sigmoid(y, w_ref, kernel_size, pad, channels):
    """K-tap 'same' zero-padded 1-D conv over the channel (sublane) axis of the tiny
    (1, C, 1) f32 vector, then sigmoid. K shifted FMAs via pltpu.roll + edge mask —
    no (C, C) matrix, no MXU. Scalar taps are read from SMEM once."""
    w_taps = [w_ref[0, j] for j in range(kernel_size)]
    cidx = lax.broadcasted_iota(jnp.int32, y.shape, 1)
    conv = jnp.zeros_like(y)
    for j in range(kernel_size):
        # conv[c] += w[j] * y[c + j - pad], zero outside [0, C).
        shift = (pad - j) % channels
        shifted = pltpu.roll(y, shift=shift, axis=1) if shift else y
        src = cidx + (j - pad)
        valid = jnp.logical_and(src >= 0, src < channels)
        conv = conv + w_taps[j] * jnp.where(valid, shifted, 0.0)
    return jax.nn.sigmoid(conv)


def _fused_eca_kernel(w_ref, x_ref, o_ref, *, kernel_size, pad, channels, inv_hw):
    # w_ref: (1, K) SMEM; x_ref / o_ref: (1, C, HW) VMEM — one full batch slab.
    # Pool + conv + sigmoid + multiply from the resident block: 1 HBM read, 1 write.
    x = x_ref[...]
    y = jnp.sum(x, axis=2, keepdims=True, dtype=jnp.float32) * jnp.float32(inv_hw)
    gate = _channel_conv_sigmoid(y, w_ref, kernel_size, pad, channels)
    o_ref[...] = x * gate.astype(o_ref.dtype)


def _pool_gate_kernel(w_ref, x_ref, gate_ref, *, kernel_size, pad, channels,
                      inv_hw, remainder):
    # w_ref: (1, K) SMEM; x_ref: (1, C, hw_tile) VMEM block for (batch, spatial tile);
    # gate_ref: (1, C, 1) f32 output block, resident across the spatial-tile axis.
    t = pl.program_id(1)

    @pl.when(t == 0)
    def _init():
        gate_ref[...] = jnp.zeros_like(gate_ref)

    x = x_ref[...]
    if remainder:
        # Last spatial tile is ragged: out-of-bounds lanes hold stale VMEM contents,
        # so zero them to keep the pooled sum exact.
        lane = lax.broadcasted_iota(jnp.int32, x.shape, 2)
        in_bounds = jnp.logical_or(t != pl.num_programs(1) - 1, lane < remainder)
        x = jnp.where(in_bounds, x, jnp.zeros_like(x))

    # Per-channel partial sum over this tile (f32 accumulation). The cross-lane
    # reduce is hidden behind the tile's HBM DMA (kernel is bandwidth-bound).
    gate_ref[...] += jnp.sum(x, axis=2, keepdims=True, dtype=jnp.float32)

    @pl.when(t == pl.num_programs(1) - 1)
    def _finalize():
        y = gate_ref[...] * jnp.float32(inv_hw)
        gate_ref[...] = _channel_conv_sigmoid(y, w_ref, kernel_size, pad, channels)


def _apply_kernel(gate_ref, x_ref, o_ref):
    # gate_ref: (1, C, 1) f32; x_ref / o_ref: (1, C, hw_tile) in the input dtype.
    o_ref[...] = x_ref[...] * gate_ref[...].astype(o_ref.dtype)


def eca_forward(x, weight, *, gamma=2, b_hyper=1,
                target_block_bytes=4 * 1024 * 1024, donate_input=False):
    """x: (B, C, H, W) NCHW (PyTorch convention). weight: (1, 1, K) Conv1d weight.
    Set donate_input=True only if the caller no longer needs x (output aliases it)."""
    bsz, ch, h, w = x.shape
    kernel_size = _eca_kernel_size(ch, gamma, b_hyper)
    pad = kernel_size // 2
    assert weight.shape == (1, 1, kernel_size)

    hw = h * w
    itemsize = jnp.dtype(x.dtype).itemsize
    hw_tile = _choose_hw_tile(ch, hw, itemsize, target_block_bytes)
    num_tiles = pl.cdiv(hw, hw_tile)

    x_flat = x.reshape(bsz, ch, hw)          # free: contiguous collapse of H, W
    w_flat = weight.reshape(1, kernel_size).astype(jnp.float32)

    # Double-buffered input + double-buffered output + small slack for gate/weight.
    block_bytes = ch * _round_up(min(hw_tile, hw), 128) * itemsize
    vmem_limit = int(min(max(4 * block_bytes + (2 << 20), 32 << 20), 48 << 20))

    io_alias = {1: 0} if donate_input else {}   # x_flat is argument index 1 below

    if num_tiles == 1:
        # Fused single pass: block dims equal the full (C, HW) extents, so no lane
        # masking is needed even when HW is not a multiple of 128.
        fused = functools.partial(
            _fused_eca_kernel, kernel_size=kernel_size, pad=pad,
            channels=ch, inv_hw=1.0 / float(hw))
        out_flat = pl.pallas_call(
            fused,
            out_shape=jax.ShapeDtypeStruct((bsz, ch, hw), x.dtype),
            grid=(bsz,),
            in_specs=[
                pl.BlockSpec((1, kernel_size), lambda b: (0, 0),
                             memory_space=pltpu.MemorySpace.SMEM),
                pl.BlockSpec((1, ch, hw), lambda b: (b, 0, 0)),
            ],
            out_specs=pl.BlockSpec((1, ch, hw), lambda b: (b, 0, 0)),
            input_output_aliases=io_alias,
            compiler_params=pltpu.CompilerParams(
                dimension_semantics=("parallel",),
                vmem_limit_bytes=vmem_limit),
        )(w_flat, x_flat)
        return out_flat.reshape(bsz, ch, h, w)

    remainder = hw % hw_tile
    pool_kernel = functools.partial(
        _pool_gate_kernel, kernel_size=kernel_size, pad=pad,
        channels=ch, inv_hw=1.0 / float(hw), remainder=remainder)

    # Pass 1: tiled global average pool (accumulated into the resident (1, C, 1)
    # output block) + 1-D channel conv + sigmoid at the last tile.
    # Note: on v7x with bsz == 1 this pass runs on a single TensorCore; a split
    # reduction axis could recover ~2x there but is not implemented.
    gate = pl.pallas_call(
        pool_kernel,
        out_shape=jax.ShapeDtypeStruct((bsz, ch, 1), jnp.float32),
        grid=(bsz, num_tiles),
        in_specs=[
            pl.BlockSpec((1, kernel_size), lambda b, t: (0, 0),
                         memory_space=pltpu.MemorySpace.SMEM),
            pl.BlockSpec((1, ch, hw_tile), lambda b, t: (b, 0, t)),
        ],
        out_specs=pl.BlockSpec((1, ch, 1), lambda b, t: (b, 0, 0)),
        compiler_params=pltpu.CompilerParams(
            dimension_semantics=("parallel", "arbitrary"),
            vmem_limit_bytes=vmem_limit),
    )(w_flat, x_flat)

    # Pass 2: broadcast-multiply each (C, hw_tile) block by the per-channel gate.
    # Out-of-bounds lanes of the ragged last block are dropped by Pallas on write.
    out_flat = pl.pallas_call(
        _apply_kernel,
        out_shape=jax.ShapeDtypeStruct((bsz, ch, hw), x.dtype),
        grid=(bsz, num_tiles),
        in_specs=[
            pl.BlockSpec((1, ch, 1), lambda b, t: (b, 0, 0)),
            pl.BlockSpec((1, ch, hw_tile), lambda b, t: (b, 0, t)),
        ],
        out_specs=pl.BlockSpec((1, ch, hw_tile), lambda b, t: (b, 0, t)),
        input_output_aliases=io_alias,
        compiler_params=pltpu.CompilerParams(
            dimension_semantics=("parallel", "parallel"),
            vmem_limit_bytes=vmem_limit),
    )(gate, x_flat)

    return out_flat.reshape(bsz, ch, h, w)


def _eca_reference(x, weight):
    """Plain-JAX reference for correctness checking."""
    bsz, ch, h, w = x.shape
    kernel_size = weight.shape[-1]
    pad = kernel_size // 2
    y = jnp.mean(x, axis=(2, 3))                               # (B, C)
    y_pad = jnp.pad(y, ((0, 0), (pad, pad)))                   # zero "same" padding
    taps = jnp.stack([y_pad[:, j:j + ch] for j in range(kernel_size)], axis=-1)
    conv = jnp.sum(taps * weight.reshape(1, 1, kernel_size), axis=-1)
    gate = jax.nn.sigmoid(conv)
    return x * gate[:, :, None, None].astype(x.dtype)


if __name__ == "__main__":
    master_key = jax.random.PRNGKey(0)

    def run_case(key, bsz, ch, h, w, **kwargs):
        k_x, k_w = jax.random.split(key)
        x = jax.random.normal(k_x, (bsz, ch, h, w), dtype=jnp.float32)
        ks = _eca_kernel_size(ch)
        bound = 1.0 / math.sqrt(ks)
        weight = jax.random.uniform(k_w, (1, 1, ks), minval=-bound, maxval=bound,
                                    dtype=jnp.float32)
        out = jax.block_until_ready(eca_forward(x, weight, **kwargs))
        ref = _eca_reference(x, weight)
        assert out.shape == x.shape
        err = jnp.max(jnp.abs(out - ref))
        assert jnp.allclose(out, ref, atol=1e-5, rtol=1e-5), f"max abs err {err}"

    k1, k2, k3, k4 = jax.random.split(master_key, 4)
    # K=3, slab fits the budget -> fused single-pass path.
    run_case(k1, 2, 16, 16, 16)
    # K=3, tiny budget -> 5 x 128-lane spatial tiles with a ragged last tile
    # (exercises tiled accumulation, lane masking, and OOB-dropped writes).
    run_case(k2, 2, 32, 24, 24, target_block_bytes=32 * 128 * 4)
    # K=3, tiny budget with an evenly dividing tile count (remainder == 0 path).
    run_case(k3, 2, 16, 16, 16, target_block_bytes=16 * 128 * 4)
    # K=5 (pad=2), wide channel count, batch=1, HW < 128 -> fused path.
    run_case(k4, 1, 512, 8, 8)

    print("KERNEL_OK")
</pallas_src>

<mosaic_0001>
module attributes {stable_mosaic.version = 11 : i64} {
  func.func @_fused_eca_kernel(%arg0: i32, %arg1: memref<1x3xf32, #tpu.memory_space<smem>>, %arg2: memref<1x16x256xf32, #tpu.memory_space<vmem>>, %arg3: memref<1x16x256xf32, #tpu.memory_space<vmem>>) attributes {dimension_semantics = [#tpu.dimension_semantics<parallel>], iteration_bounds = array<i64: 2>, scalar_prefetch = 0 : i64, scratch_operands = 0 : i64, tpu.core_type = #tpu.core_type<tc>, window_params = [{transform_indices = @transform_0, window_bounds = array<i64: 1, 3>}, {transform_indices = @transform_1, window_bounds = array<i64: 1, 16, 256>}, {transform_indices = @transform_2, window_bounds = array<i64: 1, 16, 256>}]} {
    %c0 = arith.constant 0 : index
    %c0_0 = arith.constant 0 : index
    %c0_1 = arith.constant 0 : index
    %0 = vector.load %arg2[%c0, %c0_0, %c0_1] : memref<1x16x256xf32, #tpu.memory_space<vmem>>, vector<1x16x256xf32>
    %cst = arith.constant dense<0.000000e+00> : vector<1x16xf32>
    %1 = vector.multi_reduction <add>, %0, %cst [2] : vector<1x16x256xf32> to vector<1x16xf32>
    %2 = vector.shape_cast %1 : vector<1x16xf32> to vector<1x16x1xf32>
    %cst_2 = arith.constant 3.906250e-03 : f32
    %3 = vector.broadcast %cst_2 : f32 to vector<1x16x1xf32>
    %4 = arith.mulf %2, %3 : vector<1x16x1xf32>
    %c0_3 = arith.constant 0 : index
    %c0_4 = arith.constant 0 : index
    %5 = memref.load %arg1[%c0_3, %c0_4] : memref<1x3xf32, #tpu.memory_space<smem>>
    %c0_5 = arith.constant 0 : index
    %c1 = arith.constant 1 : index
    %6 = memref.load %arg1[%c0_5, %c1] : memref<1x3xf32, #tpu.memory_space<smem>>
    %c0_6 = arith.constant 0 : index
    %c2 = arith.constant 2 : index
    %7 = memref.load %arg1[%c0_6, %c2] : memref<1x3xf32, #tpu.memory_space<smem>>
    %8 = tpu.iota {dimensions = array<i32: 1>} : vector<1x16x1xi32>
    %cst_7 = arith.constant 0.000000e+00 : f32
    %9 = vector.broadcast %cst_7 : f32 to vector<1x16x1xf32>
    %c1_i32 = arith.constant 1 : i32
    %10 = tpu.dynamic_rotate %4 by %c1_i32 dim 1 : vector<1x16x1xf32>, i32 -> vector<1x16x1xf32>
    %c-1_i32 = arith.constant -1 : i32
    %11 = vector.broadcast %c-1_i32 : i32 to vector<1x16x1xi32>
    %12 = arith.addi %8, %11 : vector<1x16x1xi32>
    %c0_i32 = arith.constant 0 : i32
    %13 = vector.broadcast %c0_i32 : i32 to vector<1x16x1xi32>
    %14 = arith.cmpi sge, %12, %13 : vector<1x16x1xi32>
    %c16_i32 = arith.constant 16 : i32
    %15 = vector.broadcast %c16_i32 : i32 to vector<1x16x1xi32>
    %16 = arith.cmpi slt, %12, %15 : vector<1x16x1xi32>
    %17 = arith.andi %14, %16 : vector<1x16x1xi1>
    %cst_8 = arith.constant 0.000000e+00 : f32
    %18 = vector.broadcast %cst_8 : f32 to vector<1x16x1xf32>
    %19 = arith.select %17, %10, %18 : vector<1x16x1xi1>, vector<1x16x1xf32>
    %20 = vector.broadcast %5 : f32 to vector<1x16x1xf32>
    %21 = arith.mulf %20, %19 : vector<1x16x1xf32>
    %22 = arith.addf %9, %21 : vector<1x16x1xf32>
    %c0_i32_9 = arith.constant 0 : i32
    %23 = vector.broadcast %c0_i32_9 : i32 to vector<1x16x1xi32>
    %24 = arith.addi %8, %23 : vector<1x16x1xi32>
    %c0_i32_10 = arith.constant 0 : i32
    %25 = vector.broadcast %c0_i32_10 : i32 to vector<1x16x1xi32>
    %26 = arith.cmpi sge, %24, %25 : vector<1x16x1xi32>
    %c16_i32_11 = arith.constant 16 : i32
    %27 = vector.broadcast %c16_i32_11 : i32 to vector<1x16x1xi32>
    %28 = arith.cmpi slt, %24, %27 : vector<1x16x1xi32>
    %29 = arith.andi %26, %28 : vector<1x16x1xi1>
    %cst_12 = arith.constant 0.000000e+00 : f32
    %30 = vector.broadcast %cst_12 : f32 to vector<1x16x1xf32>
    %31 = arith.select %29, %4, %30 : vector<1x16x1xi1>, vector<1x16x1xf32>
    %32 = vector.broadcast %6 : f32 to vector<1x16x1xf32>
    %33 = arith.mulf %32, %31 : vector<1x16x1xf32>
    %34 = arith.addf %22, %33 : vector<1x16x1xf32>
    %c15_i32 = arith.constant 15 : i32
    %35 = tpu.dynamic_rotate %4 by %c15_i32 dim 1 : vector<1x16x1xf32>, i32 -> vector<1x16x1xf32>
    %c1_i32_13 = arith.constant 1 : i32
    %36 = vector.broadcast %c1_i32_13 : i32 to vector<1x16x1xi32>
    %37 = arith.addi %8, %36 : vector<1x16x1xi32>
    %c0_i32_14 = arith.constant 0 : i32
    %38 = vector.broadcast %c0_i32_14 : i32 to vector<1x16x1xi32>
    %39 = arith.cmpi sge, %37, %38 : vector<1x16x1xi32>
    %c16_i32_15 = arith.constant 16 : i32
    %40 = vector.broadcast %c16_i32_15 : i32 to vector<1x16x1xi32>
    %41 = arith.cmpi slt, %37, %40 : vector<1x16x1xi32>
    %42 = arith.andi %39, %41 : vector<1x16x1xi1>
    %cst_16 = arith.constant 0.000000e+00 : f32
    %43 = vector.broadcast %cst_16 : f32 to vector<1x16x1xf32>
    %44 = arith.select %42, %35, %43 : vector<1x16x1xi1>, vector<1x16x1xf32>
    %45 = vector.broadcast %7 : f32 to vector<1x16x1xf32>
    %46 = arith.mulf %45, %44 : vector<1x16x1xf32>
    %47 = arith.addf %34, %46 : vector<1x16x1xf32>
    %48 = arith.negf %47 : vector<1x16x1xf32>
    %49 = math.exp %48 : vector<1x16x1xf32>
    %cst_17 = arith.constant 1.000000e+00 : f32
    %50 = vector.broadcast %cst_17 : f32 to vector<1x16x1xf32>
    %51 = arith.addf %50, %49 : vector<1x16x1xf32>
    %52 = arith.divf %50, %51 : vector<1x16x1xf32>
    %53 = vector.broadcast %52 : vector<1x16x1xf32> to vector<1x16x256xf32>
    %54 = arith.mulf %0, %53 : vector<1x16x256xf32>
    %c0_18 = arith.constant 0 : index
    %c0_19 = arith.constant 0 : index
    %c0_20 = arith.constant 0 : index
    %55 = vector.load %arg3[%c0_18, %c0_19, %c0_20] : memref<1x16x256xf32, #tpu.memory_space<vmem>>, vector<1x16x256xf32>
    tpu.vector_store %arg3[%c0_18, %c0_19, %c0_20], %54 {strides = array<i32>} : memref<1x16x256xf32, #tpu.memory_space<vmem>>, vector<1x16x256xf32>,
    return
  }
  func.func @transform_0(%arg0: i32) -> (i32, i32) {
    %c0_i32 = arith.constant 0 : i32
    %c0_i32_0 = arith.constant 0 : i32
    %c0_i32_1 = arith.constant 0 : i32
    return %c0_i32, %c0_i32_0 : i32, i32
  }
  func.func @transform_1(%arg0: i32) -> (i32, i32, i32) {
    %c0_i32 = arith.constant 0 : i32
    %c0_i32_0 = arith.constant 0 : i32
    %c0_i32_1 = arith.constant 0 : i32
    return %arg0, %c0_i32, %c0_i32_0 : i32, i32, i32
  }
  func.func @transform_2(%arg0: i32) -> (i32, i32, i32) {
    %c0_i32 = arith.constant 0 : i32
    %c0_i32_0 = arith.constant 0 : i32
    %c0_i32_1 = arith.constant 0 : i32
    return %arg0, %c0_i32, %c0_i32_0 : i32, i32, i32
  }
}

</mosaic_0001>

<bundles_post_ra>
// kernel: tpu_custom_call.1
= control target key start
LH: loop header
LB: loop body
LE: loop exit
PB: predicated region body
PF: predicated region fallthrough
CT: control target
= control target key end

     0   :  { %7 = vsyncpa [#allocation5], 0  ;;  %s803_s0 = inlined_call_operand.hbm [shape: f32[1,3], index: 0, kind: input, shape index: {}]   ;;  %s804_s1 = inlined_call_operand.hbm [shape: f32[2,16,256], index: 1, kind: input, shape index: {}]   ;;  %s805_s2 = inlined_call_operand.hbm [shape: f32[2,16,256], index: 2, kind: output, shape index: {}]  }
   0x1   :  { %8 = vsyncpa [#allocation3], 0 }
   0x2   :  { %10 = vsyncpa [#allocation3 + $0x1], 0 }
   0x3   :  { %11 = vsyncpa [#allocation4], 0 }
   0x4   :  { %13 = vsyncpa [#allocation4 + $0x1], 0  ;;  %s638_s9 = smov 0   ;;  %s640_s10 = smov 0  }
   0x5   :  { %s642_s11 = smov 0   ;;  %s644_s12 = smov 0  }
   0x6 LB: > { %s659_s13 = sadd.s32 4294967295, %s615_s12   ;;  %s406_s14 = sadd.s32 4294967294, %s615_s12   ;;  %s615_s12 = sphi %s644_s12, %s816_s12   ;;  %s611_s11 = sphi %s642_s11, %s815_s11   ;;  %s607_s10 = sphi %s640_s10, %s814_s10   ;;  %s603_s9 = sphi %s638_s9, %s813_s9  }
   0x7   : > { %s663_s15 = sadd.s32 1, %s615_s12   ;;  %s47_s16 = sadd.s32 1, %s611_s11 }
   0x8   : > { %s44_s17 = ssub.s32 %s615_s12, %s663_s15  ;;  %p54_p0 = scmp.ne.s32.totalorder %s611_s11, %s607_s10 }
   0x9   : > { %p45_p1 = scmp.eq.s32.totalorder %s44_s17, 0  ;;  %p55_p2 = scmp.eq.s32.totalorder %s615_s12, 0 }
   0xa   : > { %p60_p3 = scmp.ne.s32.totalorder %s607_s10, %s603_s9  ;;  %p61_p4 = scmp.eq.s32.totalorder %s659_s13, 0 }
   0xb   : > { %s675_s18 = scalar_select %p45_p1, %s611_s11, %s47_s16  }
   0xc   : > { %p677_p5 = por %p55_p2, %p54_p0  ;;  %p683_p6 = por %p61_p4, %p60_p3 }
   0xd   : > { %p84_p7 = scmp.eq.s32.totalorder %s659_s13, 1  ;;  %p90_p8 = scmp.eq.s32.totalorder %s406_s14, 1 }
   0xe   : > { %p407_p9 = scmp.ge.s32.totalorder %s615_s12, 1  ;;  %p97_p10 = scmp.lt.s32.totalorder %s615_s12, 3 }
   0xf   : > { %p690_p11 = por %p84_p7, %p54_p0  ;;  %p694_p12 = por %p90_p8, %p60_p3 }
  0x10   : > { %p698_p13 = pnand %p407_p9, %p97_p10  ;;  %s109_s26 = sshll.u32 %s803_s0, 4  ;;  %s110_s26 = int_to_ptr.hbm [resolvable:$true] %s109_s26 }
  0x11   : > { %p449_p2 = scmp.lt.s32.totalorder %s615_s12, 2  ;;  %s120_s27 = sand.u32 1, %s611_s11  }
  0x12   : > { %p436_p1 = pneg %p698_p13  ;;  %s410_s29 = sshll.u32 %s120_s27, 5 }
  0x13   : > { %p714_p3 = pnand %p449_p2, %p677_p5  ;;  %s617_s30 = smov [#allocation2]  }
  0x14   : > { %p437_p7 = pnand %p436_p1, %p61_p4  ;;  %s426_s3 = sshll.u32 %s615_s12, 5 }
  0x15   : > { %s124_s4 = scalar_lea.vmem [#allocation6], %s410_s29  ;;  %s129_s8 = scalar_lea.hbm %s804_s1, %s426_s3 }
  0x16   : > { %439 = dma.hbm_to_smem (!%p437_p7), %s110_s26, 16, %s617_s30, [#allocation5]  }
  0x17   : > { %s132_s5 = sshll.u32 %s124_s4, 4  ;;  %s130_s14 = sshll.u32 %s129_s8, 4  ;;  %s133_s5 = int_to_ptr.vmem [resolvable:$true] %s132_s5  ;;  %s131_s14 = int_to_ptr.hbm [resolvable:$true] %s130_s14 }
  0x18   : > { %s121_s16 = scalar_lea.sflag [#allocation3], %s120_s27  ;;  %s515_s17 = sshra.s32 %s131_s14, 4  ;;  %s516_s17 = int_to_ptr.hbm [resolvable:$true] %s515_s17 }
  0x19   : > { %s517_s19 = scalar_lea.hbm %s516_s17, 32  ;;  %p519_p8 = pneg %p714_p3 }
  0x1a   : > { %p518_p5 = scmp.ne.s32.totalorder %s516_s17, %s517_s19  ;;  %s522_s26 = scalar_lea.hbm %s804_s1, 64 }
  0x1b   : > { %p523_p1 = scmp.lt.s32.totalorder %s516_s17, %s804_s1  ;;  %p524_p2 = scmp.lt.s32.totalorder %s522_s26, %s517_s19 }
  0x1c   : > { %p520_p9 = pnand %p519_p8, %p518_p5 }
  0x1d   : > { %p525_p7 = por %p524_p2, %p523_p1 }
  0x1e   : > { %p521_p10 = pneg %p520_p9 }
  0x20   : > { %p526_p0 = pnand %p525_p7, %p521_p10 }
  0x22   : > { %529 = shalt.err (!%p526_p0)
}
  0x23   : > { %s618_s27 = smov 256   ;;  %s619_s3 = smov 16  }
  0x24   : > { %443 = dma.hbm_to_vmem [thread:$0]  (!%p714_p3), %s131_s14, 512, %s133_s5, %s121_s16, %s618_s27, %s618_s27, %s619_s3  }
  0x25   : > { %144 = sbr.rel (%p698_p13) target bundleno = 346 (0x15a), region = 28 }
  0x2a   : > { %590 = dma.done.wait (%p61_p4), [#allocation5], 16  }
  0x2b   : > { %592 = vsyncadd (%p61_p4), [#allocation5], 4294967280  ;;  %s739_s4 = sand.u32 1, %s607_s10  }
  0x2c   : > { %s415_s6 = sshll.u32 %s739_s4, 5  ;;  %s152_s7 = scalar_lea.sflag [#allocation3], %s739_s4 }
  0x2d   : > { %s155_s28 = scalar_lea.vmem [#allocation6], %s415_s6 }
  0x2e   : > { %594 = dma.done.wait (%p683_p6), %s152_s7, 512  }
  0x2f   : > { %596 = vsyncadd (%p683_p6), %s152_s7, 4294966784 }
  0x30   : > { %161 = sfence }
  0x31   : > { %v749_v0 = vld [vmem:[%s155_s28] sm:$0xff]  ;;  %v751_v1 = vld [vmem:[%s155_s28 + $0x8] sm:$0xff]  ;;  %v755_v3 = vld [vmem:[%s155_s28 + $0x10] sm:$0xff]  ;;  %v193_v6 = vlaneseq  ;;  %s761_s20 = sld [smem:[#allocation2]]  ;;  %v620_v9 = vmov 0   ;;  %s427_s8 = sshll.u32 %s659_s13, 5 }
  0x32   : > { %v182_v2 = vadd.f32 %v751_v1, %v749_v0  ;;  %v757_v4 = vld [vmem:[%s155_s28 + $0x18] sm:$0xff]  ;;  %490 = vset.pattern.permute.xlu1 %v620_v9  ;;  %491 = vset.pattern.permute.xlu0 %v620_v9  ;;  %s417_s23 = sld [smem:[#allocation2 + $0x1]]  ;;  %s177_s14 = scalar_lea.vmem [#allocation7], %s415_s6 }
  0x33   : > { %v185_v5 = vadd.f32 %v757_v4, %v755_v3  ;;  %v194_v7 = vshrl.u32 %v193_v6, 7  ;;  %s418_s5 = sld [smem:[#allocation2 + $0x2]]  ;;  %s317_s19 = scalar_lea.hbm %s805_s2, %s427_s8 }
  0x34   : > { %183 = vadd.xlane.f32.xlu0 %v182_v2  ;;  %s318_s24 = sshll.u32 %s177_s14, 4  ;;  %s320_s25 = sshll.u32 %s317_s19, 4  ;;  %s319_s24 = int_to_ptr.vmem [resolvable:$true] %s318_s24  ;;  %s321_s25 = int_to_ptr.hbm [resolvable:$true] %s320_s25 }
  0x35   : > { %v195_v10 = vadd.s32 8, %v194_v7  ;;  %v201_v11 = vadd.s32 4294967295, %v194_v7  ;;  %vm198_vm0 = vcmp.lt.s32.totalorder %v194_v7, 1  ;;  %vm231_vm2 = vcmp.lt.s32.totalorder %v194_v7, 7  ;;  %s306_s13 = scalar_lea.sflag [#allocation4], %s739_s4  ;;  %s559_s26 = sshra.s32 %s321_s25, 4  ;;  %s560_s26 = int_to_ptr.hbm [resolvable:$true] %s559_s26 }
  0x36   : > { %s561_s29 = scalar_lea.hbm %s560_s26, 32  ;;  %s565_s3 = scalar_lea.hbm %s805_s2, 64 }
  0x37   : > { %v235_v12 = vadd.s32 1, %v195_v10  ;;  %v211_v15 = vstv %s761_s20  ;;  %vm203_vm1 = vcmp.ge.s32.totalorder %v201_v11, 0  ;;  %p562_p4 = scmp.ne.s32.totalorder %s560_s26, %s561_s29  ;;  %p566_p0 = scmp.lt.s32.totalorder %s560_s26, %s805_s2 }
  0x38   : > { %v224_v21 = vstv %s417_s23  ;;  %p567_p3 = scmp.lt.s32.totalorder %s565_s3, %s561_s29 }
  0x39   : > { %vm239_vm3 = vcmp.lt.s32.totalorder %v235_v12, 16  ;;  %v244_v22 = vstv %s418_s5  ;;  %p563_p6 = pnand %p562_p4, %p690_p11 }
  0x3a   : > { %p568_p5 = por %p567_p3, %p566_p0 }
  0x3b   : > { %p564_p13 = pneg %p563_p6 }
  0x3c   : > { %186 = vadd.xlane.f32.xlu0 %v185_v5 }
  0x3d   : > { %p569_p8 = pnand %p568_p5, %p564_p13 }
  0xa7   : > { %v184_v8 = vpop.xlane.xlu0 %183 }
  0xa8   : > { %v188_v13 = vmul.f32 0.00390625, %v184_v8 }
  0xaa   : > { %v196_v17 = vrot.slane %v188_v13, 7  ;;  %v229_v18 = vrot.slane %v188_v13, 1  ;;  %v225_v31 = vmul.f32 %v224_v21, %v188_v13 }
  0xaf   : > { %v187_v14 = vpop.xlane.xlu0 %186 }
  0xb0   : > { %v189_v16 = vmul.f32 0.00390625, %v187_v14 }
  0xb2   : > { %v197_v19 = vrot.slane %v189_v16, 7  ;;  %v230_v20 = vrot.slane %v189_v16, 1  ;;  %v226_v25 = vmul.f32 %v224_v21, %v189_v16 }
  0xb4   : > { %v199_v23 = vsel %vm198_vm0, %v196_v17, %v197_v19  ;;  %v200_v24 = vsel %vm198_vm0, %v197_v19, %v196_v17  ;;  %v233_v26 = vsel %vm231_vm2, %v230_v20, %v229_v18  ;;  %v232_v29 = vsel %vm231_vm2, %v229_v18, %v230_v20 }
  0xb5   : > { %v209_v27 = vsel %vm203_vm1, %v200_v24, 0.0  ;;  %v213_v28 = vmul.f32 %v211_v15, %v199_v23  ;;  %v243_v30 = vsel %vm239_vm3, %v233_v26, 0.0  ;;  %v245_v36 = vmul.f32 %v244_v22, %v232_v29 }
  0xb6   : > { %v212_v32 = vmul.f32 %v211_v15, %v209_v27  ;;  %v246_v33 = vmul.f32 %v244_v22, %v243_v30 }
  0xb7   : > { %v228_v34 = vadd.f32 %v226_v25, %v213_v28 }
  0xb8   : > { %v227_v35 = vadd.f32 %v225_v31, %v212_v32 }
  0xb9   : > { %v248_v37 = vadd.f32 %v246_v33, %v228_v34 }
  0xba   : > { %v247_v38 = vadd.f32 %v245_v36, %v227_v35 }
  0xbb   : > { %v420_v39 = vmul.f32 -1.442695, %v248_v37 }
  0xbc   : > { %v419_v40 = vmul.f32 -1.442695, %v247_v38 }
  0xbd   : > { %492 = vpow2.f32 %v420_v39 }
  0xbe   : > { %494 = vpow2.f32 %v419_v40 }
  0xc3   : > { %v493_v41 = vpop.eup %492 }
  0xc4   : > { %v495_v42 = vpop.eup %494  ;;  %v256_v43 = vadd.f32 1.0, %v493_v41 }
  0xc5   : > { %v255_v44 = vadd.f32 1.0, %v495_v42 }
  0xc6   : > { %496 = vrcp.f32 %v256_v43  ;;  %v283_v60 = vand.u32 2147483648, %v256_v43  ;;  %vm277_vm9 = vweird.f32 %v256_v43  ;;  %v281_v61 = vand.u32 2147483647, %v256_v43 }
  0xc7   : > { %498 = vrcp.f32 %v255_v44  ;;  %v268_v51 = vand.u32 2147483648, %v255_v44  ;;  %v266_v53 = vand.u32 2147483647, %v255_v44  ;;  %vm262_vm5 = vweird.f32 %v255_v44 }
  0xc8   : > { %v284_v63 = vor.u32 1.1754944e-38, %v283_v60  ;;  %vm282_vm11 = vcmp.eq.f32.partialorder %v281_v61, 8.507059e+37 }
  0xc9   : > { %v269_v56 = vor.u32 1.1754944e-38, %v268_v51  ;;  %vm267_vm7 = vcmp.eq.f32.partialorder %v266_v53, 8.507059e+37 }
  0xcc   : > { %v497_v45 = vpop.eup %496 }
  0xcd   : > { %v499_v46 = vpop.eup %498  ;;  %v273_v47 = vmul.f32 %v497_v45, %v256_v43  ;;  %vm278_vm8 = vweird.f32 %v497_v45 }
  0xce   : > { %v258_v48 = vmul.f32 %v499_v46, %v255_v44  ;;  %vm263_vm4 = vweird.f32 %v499_v46  ;;  %vm279_vm10 = vmor %vm277_vm9, %vm278_vm8 }
  0xcf   : > { %v274_v50 = vsub.f32 1.0, %v273_v47  ;;  %vm264_vm6 = vmor %vm262_vm5, %vm263_vm4 }
  0xd0   : > { %v259_v49 = vsub.f32 1.0, %v258_v48 }
  0xd1   : > { %v275_v55 = vmul.f32 %v497_v45, %v274_v50 }
  0xd2   : > { %v260_v52 = vmul.f32 %v499_v46, %v259_v49 }
  0xd3   : > { %v276_v59 = vadd.f32 %v497_v45, %v275_v55 }
  0xd4   : > { %v261_v54 = vadd.f32 %v499_v46, %v260_v52 }
  0xd5   : > { %v280_v62 = vsel %vm279_vm10, %v497_v45, %v276_v59 }
  0xd6   : > { %v265_v57 = vsel %vm264_vm6, %v499_v46, %v261_v54  ;;  %v285_v2 = vsel %vm282_vm11, %v284_v63, %v280_v62 }
  0xd7   : > { %v270_v58 = vsel %vm267_vm7, %v269_v56, %v265_v57 }
  0xd8   : > { %289 = vperm.xlu1 %490, %v270_v58  }
  0xe0   : > { %294 = vperm.xlu1 %490, %v285_v2  }
 0x14a   : > { %v290_v5 = vpop.permute.xlu1 %289 }
 0x14b   : > { %v297_v6 = vmul.f32 %v290_v5, %v749_v0  ;;  %v298_v7 = vmul.f32 %v290_v5, %v751_v1 }
 0x14d   : > { %301 = vst [vmem:[%s177_s14] sm:$0xff] %v297_v6 }
 0x14e   : > { %302 = vst [vmem:[%s177_s14 + $0x8] sm:$0xff] %v298_v7 }
 0x152   : > { %v295_v8 = vpop.permute.xlu1 %294 }
 0x153   : > { %v299_v9 = vmul.f32 %v295_v8, %v755_v3  ;;  %v300_v10 = vmul.f32 %v295_v8, %v757_v4 }
 0x155   : > { %303 = vst [vmem:[%s177_s14 + $0x10] sm:$0xff] %v299_v9 }
 0x156   : > { %304 = vst [vmem:[%s177_s14 + $0x18] sm:$0xff] %v300_v10 }
 0x157   : > { %572 = shalt.err (!%p569_p8)
}
 0x158   : > { %s621_s4 = smov 256   ;;  %s622_s28 = smov 16  }
 0x159   : > { %434 = dma.vmem_to_hbm [thread:$0]  (%p690_p11), %s319_s24, 512, %s321_s25, %s306_s13, %s621_s4, %s621_s4, %s622_s28  }
 0x15a PF: > { %s335_s20 = sand.u32 1, %s603_s9   ;;  %p812_p9 = scmp.ge.s32.totalorder %s615_s12, 2 }
 0x15b   : > { %s336_s23 = scalar_lea.sflag [#allocation4], %s335_s20 }
 0x15c   : > { %p445_p10 = pnand %p812_p9, %p694_p12 }
 0x15e   : > { %p446_p1 = pneg %p445_p10 }
 0x160   : > { %598 = dma.done.wait (%p446_p1), %s336_s23, 512  }
 0x161   : > { %600 = vsyncadd (%p446_p1), %s336_s23, 4294966784  ;;  %p16_p2 = scmp.ge.s32.totalorder %s663_s15, 4   ;;  %s813_s9 = smov %s607_s10 }
 0x162   : > { %s814_s10 = smov %s611_s11  ;;  %s815_s11 = smov %s675_s18 }
 0x163   : > { %s816_s12 = smov %s663_s15  ;;  %18 = sbr.rel (!%p16_p2) target bundleno = 6 (0x6), region = 78 }
 0x168   :  { %342 = vsyncpa [#allocation3], 1 }
 0x169   :  { %344 = vsyncpa [#allocation3 + $0x1], 1 }
 0x16a   :  { %345 = vsyncpa [#allocation4], 1 }
 0x16b   :  { %347 = vsyncpa [#allocation4 + $0x1], 1 }
 0x16c   :  { %348 = vsyncpa [#allocation5], 1 }
 0x16d   :  { %350 = vsyncpa [#allocation5 + $0x1], 1 }

</bundles_post_ra>
